<compile_context>
chip_gen: v6e
topology: v6e:2x2x1
jax: 0.10.0
libtpu: 0.0.40
codegen_flags: <defaults>
</compile_context>

<pallas_src>
import jax
import jax.numpy as jnp
from jax.experimental import pallas as pl
from jax.experimental.pallas import tpu as pltpu


def _round_up(x, m):
    return ((x + m - 1) // m) * m


def _pad8(n):
    return _round_up(n, 8)


# ----------------------------- Pallas kernel ---------------------------------
def _make_kernel(c_in, c_out, wp, tile, split_stores):
    """Kernel over one lane tile of the flattened padded grid (Np = B*(H+2)*(W+2))."""
    kh = kw = 3
    c_img = c_in - 1

    def kernel(w_ref, b_ref, cur_ref, halo_ref, out_ref):
        # Overlapping read window = current tile ++ small halo slab.  All 3x3 taps
        # (max flat offset 2*wp + 2 <= halo width) stay in bounds; no duplicated
        # full-tile neighbour read.
        win = jnp.concatenate([cur_ref[...], halo_ref[...]], axis=1)   # (c_in, tile+halo)
        img_w = win[:c_img, :]                                         # raw image rows
        m_w = win[c_img:, :]                                           # mask row

        # Generator input = [image*(1-mask), mask]; masking fused in-kernel
        # (reflect-pad commutes with the element-wise product).
        x_w = jnp.concatenate([img_w * (1.0 - m_w), m_w], axis=0)      # (c_in, tile+halo)

        # Fused im2col: the 9 conv taps are lane-offset windows of all c_in channels.
        # Row order = (dy, dx)-major / channel-minor; weights are permuted to match
        # in the wrapper.  The (36, tile) slab keeps sublanes well packed.
        patches = jnp.concatenate(
            [x_w[:, dy * wp + dx: dy * wp + dx + tile]
             for dy in range(kh) for dx in range(kw)], axis=0)         # (36, tile)

        # One small MXU matmul replaces ~216 VALU mul/adds per pixel.
        z = jnp.dot(w_ref[...], patches,
                    preferred_element_type=jnp.float32)                # (8, tile)
        z = z[:c_out, :] + b_ref[...]                                  # + bias (c_out,1)
        pred = 1.0 / (1.0 + jnp.exp(-z))                               # sigmoid (EUP exp)

        # Original image / mask at the output pixel == centre tap of the window.
        ctr = wp + 1
        img_c = img_w[:, ctr:ctr + tile]
        m_c = m_w[:, ctr:ctr + tile]

        diff = pred - img_c                                            # shared vreg
        inpaint = img_c + m_c * diff                                   # == m*pred + (1-m)*img
        l1 = jnp.abs(diff)                                             # L1(reduction='none')

        if split_stores:
            # f32: three row-range writes, no (9, tile) temporary.
            out_ref[0:c_out, :] = pred.astype(out_ref.dtype)
            out_ref[c_out:2 * c_out, :] = inpaint.astype(out_ref.dtype)
            out_ref[2 * c_out:3 * c_out, :] = l1.astype(out_ref.dtype)
        else:
            # packed dtypes (bf16): single full-block store avoids sub-sublane
            # packed stores.
            out_ref[...] = jnp.concatenate([pred, inpaint, l1],
                                           axis=0).astype(out_ref.dtype)

    return kernel


# ------------------------------ JAX wrapper -----------------------------------
def inpainting_forward(image, mask, weight, bias, *, tile_n=32768,
                       out_dtype=jnp.float32):
    """image: [B,3,H,W] f32, mask: [B,1,H,W] f32 (1 = hole).
    weight: [C_out, C_in=4, 3, 3], bias: [C_out].
    tile_n: lane tile (multiple of 128; sweep 16K-64K on real shapes; watch the
            64 MiB/TC VMEM budget on v7x).
    out_dtype: float32 (default) or bfloat16 (halves write traffic on HBM-bound
            v5e; l1 is precision-sensitive, hence f32 default)."""
    B, C_img, H, W = image.shape
    C_out, C_in, KH, KW = weight.shape
    assert C_in == C_img + 1 and (KH, KW) == (3, 3)
    assert mask.shape == (B, 1, H, W)
    assert tile_n % 128 == 0 and tile_n >= 128

    Hp, Wp = H + 2, W + 2
    Np = B * Hp * Wp
    K = C_in * KH * KW
    out_rows = 3 * C_out
    out_bytes = jnp.dtype(out_dtype).itemsize

    # glue: raw [image, mask], reflect-padded, flattened channel-major [4, Np].
    # Conv outputs are computed on the padded grid; border positions (y >= H or
    # x >= W) read across row/batch/zero padding and are discarded below.
    inp4 = jnp.concatenate([image, mask], axis=1).astype(jnp.float32)          # [B,4,H,W]
    inp4 = jnp.pad(inp4, ((0, 0), (0, 0), (1, 1), (1, 1)), mode='reflect')     # [B,4,Hp,Wp]
    inp_flat = inp4.transpose(1, 0, 2, 3).reshape(C_in, Np)

    # Lane tile: big (amortizes the ~0.35 us/step pipeline overhead), clamped to
    # the problem, multiple of 128 (lane-dense stores).  Split so the grid has at
    # least 2 steps so both v7x TensorCores get work under dimension_semantics.
    tile = min(tile_n, _round_up(Np, 128))
    if Np > 128 and _round_up(Np, tile) // tile < 2:
        tile = _round_up(pl.cdiv(Np, 2), 128)
    Np_pad = _round_up(Np, tile)
    nb = Np_pad // tile

    # Halo slab: per block, the first (2*Wp + 2) lanes after the block, rounded up
    # to 128.  This (small) slab is the only duplicated input traffic.  Taps that
    # fall into zero padding only affect discarded padded-grid-border outputs.
    halo_pad = _round_up(2 * Wp + 2, 128)
    inp_ext = jnp.pad(inp_flat, ((0, 0), (0, Np_pad - Np + halo_pad)))
    inp_main = inp_ext[:, :Np_pad]
    halo_slab = jnp.concatenate(
        [inp_ext[:, (i + 1) * tile:(i + 1) * tile + halo_pad] for i in range(nb)],
        axis=1)                                                                 # [4, nb*halo_pad]

    # Weights permuted to the (dy, dx)-major / channel-minor patch row order and
    # sublane-padded to 8 rows for the MXU; bias as a (C_out, 1) column.
    w_perm = weight.transpose(0, 2, 3, 1).reshape(C_out, K).astype(jnp.float32)
    w_pad = jnp.zeros((_pad8(C_out), K), jnp.float32).at[:C_out].set(w_perm)
    b_col = bias.reshape(C_out, 1).astype(jnp.float32)

    kernel = _make_kernel(C_in, C_out, Wp, tile,
                          split_stores=(jnp.dtype(out_dtype) == jnp.float32))

    cost = pl.CostEstimate(
        flops=(2 * C_out * K + 12 * C_out) * Np_pad,
        transcendentals=C_out * Np_pad,
        bytes_accessed=(C_in * 4 + out_rows * out_bytes) * Np_pad
        + C_in * 4 * nb * halo_pad)

    # Per-step VMEM footprint including in-kernel temporaries (window, masked
    # window, im2col slab, z/pred/centre-taps/diff/inpaint/l1), not just the
    # double-buffered pipeline blocks.
    per_lane = (
        2 * _pad8(C_in) * 4                 # current block, double-buffered
        + 2 * _pad8(out_rows) * out_bytes   # packed output block, double-buffered
        + 2 * _pad8(C_in) * 4               # window + masked-window temporaries
        + _pad8(K) * 4                      # im2col patch slab
        + 8 * _pad8(C_out) * 4)             # z / pred / img_c / m_c / diff / inpaint / l1
    footprint = per_lane * tile + 4 * _pad8(C_in) * halo_pad * 4 + (2 << 20)
    vmem_limit = int(min(100 << 20, max(32 << 20, 2 * footprint)))

    out = pl.pallas_call(
        kernel,
        out_shape=jax.ShapeDtypeStruct((out_rows, Np_pad), out_dtype),
        grid=(nb,),
        in_specs=[
            pl.BlockSpec((w_pad.shape[0], K), lambda i: (0, 0)),     # weights (resident)
            pl.BlockSpec((C_out, 1), lambda i: (0, 0)),              # bias (resident)
            pl.BlockSpec((C_in, tile), lambda i: (0, i)),            # current lane tile
            pl.BlockSpec((C_in, halo_pad), lambda i: (0, i)),        # right-halo slab
        ],
        out_specs=pl.BlockSpec((out_rows, tile), lambda i: (0, i)),
        compiler_params=pltpu.CompilerParams(
            dimension_semantics=("parallel",),
            vmem_limit_bytes=vmem_limit),
        cost_estimate=cost,
    )(w_pad, b_col, inp_main, halo_slab)

    # Drop lane padding + padded-grid borders, unflatten to NCHW.
    out = out[:, :Np].reshape(out_rows, B, Hp, Wp)[:, :, :H, :W]

    def grp(lo):
        return out[lo:lo + C_out].transpose(1, 0, 2, 3).astype(jnp.float32)

    return {
        "predicted_image": grp(0),
        "inpainted": grp(C_out),
        "l1_per_pixel": grp(2 * C_out),
    }


# ------------------------- pure-JAX reference (check) -------------------------
def _reference_forward(image, mask, weight, bias):
    masked = image * (1.0 - mask)
    x = jnp.concatenate([masked, mask], axis=1)
    xp = jnp.pad(x, ((0, 0), (0, 0), (1, 1), (1, 1)), mode='reflect')
    z = jax.lax.conv_general_dilated(
        xp, weight, window_strides=(1, 1), padding='VALID',
        dimension_numbers=('NCHW', 'OIHW', 'NCHW'),
        precision=jax.lax.Precision.HIGHEST)
    z = z + bias.reshape(1, -1, 1, 1)
    pred = 1.0 / (1.0 + jnp.exp(-z))
    inpaint = mask * pred + (1.0 - mask) * image
    l1 = jnp.abs(pred - image)
    return {"predicted_image": pred, "inpainted": inpaint, "l1_per_pixel": l1}


# --------------------------------- main ----------------------------------------
if __name__ == "__main__":
    key = jax.random.PRNGKey(0)
    k_img, k_mask, k_w, k_b = jax.random.split(key, 4)

    B, C, H, W = 2, 3, 16, 16
    image = jax.random.uniform(k_img, (B, C, H, W), dtype=jnp.float32)
    mask = (jax.random.uniform(k_mask, (B, 1, H, W)) > 0.7).astype(jnp.float32)

    # Deterministic synthetic generator parameters (proxy for FFCResNetGenerator).
    C_out, C_in = 3, 4
    weight = 0.1 * jax.random.normal(k_w, (C_out, C_in, 3, 3), dtype=jnp.float32)
    bias = 0.1 * jax.random.normal(k_b, (C_out,), dtype=jnp.float32)

    # Default (large, clamped, nb>=2) tile, a small tile that exercises the
    # multi-block halo path, and the bf16-output (v5e) path.
    out_big = inpainting_forward(image, mask, weight, bias)
    out_small = inpainting_forward(image, mask, weight, bias, tile_n=256)
    out_bf16 = inpainting_forward(image, mask, weight, bias, out_dtype=jnp.bfloat16)
    jax.block_until_ready((out_big, out_small, out_bf16))

    ref = _reference_forward(image, mask, weight, bias)
    # 5e-3 tolerance leaves headroom for reduced-precision MXU passes on the tiny
    # 3x36 matmul; indexing/halo/ordering bugs would show up as O(0.1-1) errors.
    for name in ("predicted_image", "inpainted", "l1_per_pixel"):
        assert out_big[name].shape == (B, C, H, W)
        for o in (out_big, out_small):
            err = float(jnp.max(jnp.abs(o[name] - ref[name])))
            assert err < 5e-3, (name, err)
        err_bf16 = float(jnp.max(jnp.abs(out_bf16[name] - ref[name])))
        assert err_bf16 < 2e-2, (name, "bf16", err_bf16)

    print("KERNEL_OK")
</pallas_src>

<mosaic_0001>
module attributes {stable_mosaic.version = 11 : i64} {
  func.func @kernel(%arg0: i32, %arg1: memref<8x36xf32, #tpu.memory_space<vmem>>, %arg2: memref<3x1xf32, #tpu.memory_space<vmem>>, %arg3: memref<4x384xf32, #tpu.memory_space<vmem>>, %arg4: memref<4x128xf32, #tpu.memory_space<vmem>>, %arg5: memref<9x384xf32, #tpu.memory_space<vmem>>) attributes {dimension_semantics = [#tpu.dimension_semantics<parallel>], iteration_bounds = array<i64: 2>, scalar_prefetch = 0 : i64, scratch_operands = 0 : i64, tpu.core_type = #tpu.core_type<tc>, window_params = [{pipeline_mode = #tpu.pipeline_mode<synchronous>, transform_indices = @transform_0, window_bounds = array<i64: 8, 36>}, {pipeline_mode = #tpu.pipeline_mode<synchronous>, transform_indices = @transform_1, window_bounds = array<i64: 3, 1>}, {transform_indices = @transform_2, window_bounds = array<i64: 4, 384>}, {transform_indices = @transform_3, window_bounds = array<i64: 4, 128>}, {transform_indices = @transform_4, window_bounds = array<i64: 9, 384>}]} {
    %c0 = arith.constant 0 : index
    %c0_0 = arith.constant 0 : index
    %0 = vector.load %arg3[%c0, %c0_0] : memref<4x384xf32, #tpu.memory_space<vmem>>, vector<4x384xf32>
    %c0_1 = arith.constant 0 : index
    %c0_2 = arith.constant 0 : index
    %1 = vector.load %arg4[%c0_1, %c0_2] : memref<4x128xf32, #tpu.memory_space<vmem>>, vector<4x128xf32>
    %2 = tpu.concatenate %0, %1 in 1 : vector<4x384xf32>, vector<4x128xf32> -> vector<4x512xf32>
    %3 = vector.extract_strided_slice %2 {offsets = [0, 0], sizes = [3, 512], strides = [1, 1]} : vector<4x512xf32> to vector<3x512xf32>
    %4 = vector.extract_strided_slice %2 {offsets = [3, 0], sizes = [1, 512], strides = [1, 1]} : vector<4x512xf32> to vector<1x512xf32>
    %cst = arith.constant 1.000000e+00 : f32
    %5 = vector.broadcast %cst : f32 to vector<1x512xf32>
    %6 = arith.subf %5, %4 : vector<1x512xf32>
    %7 = vector.broadcast %6 : vector<1x512xf32> to vector<3x512xf32>
    %8 = arith.mulf %3, %7 : vector<3x512xf32>
    %9 = tpu.concatenate %8, %4 in 0 : vector<3x512xf32>, vector<1x512xf32> -> vector<4x512xf32>
    %10 = vector.extract_strided_slice %9 {offsets = [0, 0], sizes = [4, 384], strides = [1, 1]} : vector<4x512xf32> to vector<4x384xf32>
    %11 = vector.extract_strided_slice %9 {offsets = [0, 1], sizes = [4, 384], strides = [1, 1]} : vector<4x512xf32> to vector<4x384xf32>
    %12 = vector.extract_strided_slice %9 {offsets = [0, 2], sizes = [4, 384], strides = [1, 1]} : vector<4x512xf32> to vector<4x384xf32>
    %13 = vector.extract_strided_slice %9 {offsets = [0, 18], sizes = [4, 384], strides = [1, 1]} : vector<4x512xf32> to vector<4x384xf32>
    %14 = vector.extract_strided_slice %9 {offsets = [0, 19], sizes = [4, 384], strides = [1, 1]} : vector<4x512xf32> to vector<4x384xf32>
    %15 = vector.extract_strided_slice %9 {offsets = [0, 20], sizes = [4, 384], strides = [1, 1]} : vector<4x512xf32> to vector<4x384xf32>
    %16 = vector.extract_strided_slice %9 {offsets = [0, 36], sizes = [4, 384], strides = [1, 1]} : vector<4x512xf32> to vector<4x384xf32>
    %17 = vector.extract_strided_slice %9 {offsets = [0, 37], sizes = [4, 384], strides = [1, 1]} : vector<4x512xf32> to vector<4x384xf32>
    %18 = vector.extract_strided_slice %9 {offsets = [0, 38], sizes = [4, 384], strides = [1, 1]} : vector<4x512xf32> to vector<4x384xf32>
    %19 = tpu.concatenate %10, %11, %12, %13, %14, %15, %16, %17, %18 in 0 : vector<4x384xf32>, vector<4x384xf32>, vector<4x384xf32>, vector<4x384xf32>, vector<4x384xf32>, vector<4x384xf32>, vector<4x384xf32>, vector<4x384xf32>, vector<4x384xf32> -> vector<36x384xf32>
    %c0_3 = arith.constant 0 : index
    %c0_4 = arith.constant 0 : index
    %20 = vector.load %arg1[%c0_3, %c0_4] : memref<8x36xf32, #tpu.memory_space<vmem>>, vector<8x36xf32>
    %cst_5 = arith.constant dense<0.000000e+00> : vector<8x384xf32>
    %21 = tpu.matmul %20, %19, %cst_5 {dimension_numbers = #tpu.dot_dimension_numbers<[1], [0], [0], [1], [0, 0, 1, 1], [], []>} : vector<8x36xf32>, vector<36x384xf32>, vector<8x384xf32> -> vector<8x384xf32>
    %22 = vector.extract_strided_slice %21 {offsets = [0, 0], sizes = [3, 384], strides = [1, 1]} : vector<8x384xf32> to vector<3x384xf32>
    %c0_6 = arith.constant 0 : index
    %c0_7 = arith.constant 0 : index
    %23 = vector.load %arg2[%c0_6, %c0_7] : memref<3x1xf32, #tpu.memory_space<vmem>>, vector<3x1xf32>
    %24 = vector.broadcast %23 : vector<3x1xf32> to vector<3x384xf32>
    %25 = arith.addf %22, %24 : vector<3x384xf32>
    %cst_8 = arith.constant 0.000000e+00 : f32
    %26 = vector.broadcast %cst_8 : f32 to vector<3x384xf32>
    %27 = arith.subf %26, %25 : vector<3x384xf32>
    %28 = math.exp %27 : vector<3x384xf32>
    %cst_9 = arith.constant 1.000000e+00 : f32
    %29 = vector.broadcast %cst_9 : f32 to vector<3x384xf32>
    %30 = arith.addf %29, %28 : vector<3x384xf32>
    %cst_10 = arith.constant 1.000000e+00 : f32
    %31 = vector.broadcast %cst_10 : f32 to vector<3x384xf32>
    %32 = arith.divf %31, %30 : vector<3x384xf32>
    %33 = vector.extract_strided_slice %3 {offsets = [0, 19], sizes = [3, 384], strides = [1, 1]} : vector<3x512xf32> to vector<3x384xf32>
    %34 = vector.extract_strided_slice %4 {offsets = [0, 19], sizes = [1, 384], strides = [1, 1]} : vector<1x512xf32> to vector<1x384xf32>
    %35 = arith.subf %32, %33 : vector<3x384xf32>
    %36 = vector.broadcast %34 : vector<1x384xf32> to vector<3x384xf32>
    %37 = arith.mulf %36, %35 : vector<3x384xf32>
    %38 = arith.addf %33, %37 : vector<3x384xf32>
    %39 = math.absf %35 : vector<3x384xf32>
    %c0_11 = arith.constant 0 : index
    %c0_12 = arith.constant 0 : index
    %40 = vector.load %arg5[%c0_11, %c0_12] : memref<9x384xf32, #tpu.memory_space<vmem>>, vector<3x384xf32>
    tpu.vector_store %arg5[%c0_11, %c0_12], %32 {strides = array<i32>} : memref<9x384xf32, #tpu.memory_space<vmem>>, vector<3x384xf32>,
    %c3 = arith.constant 3 : index
    %c0_13 = arith.constant 0 : index
    %41 = vector.load %arg5[%c3, %c0_13] : memref<9x384xf32, #tpu.memory_space<vmem>>, vector<3x384xf32>
    tpu.vector_store %arg5[%c3, %c0_13], %38 {strides = array<i32>} : memref<9x384xf32, #tpu.memory_space<vmem>>, vector<3x384xf32>,
    %c6 = arith.constant 6 : index
    %c0_14 = arith.constant 0 : index
    %42 = vector.load %arg5[%c6, %c0_14] : memref<9x384xf32, #tpu.memory_space<vmem>>, vector<3x384xf32>
    tpu.vector_store %arg5[%c6, %c0_14], %39 {strides = array<i32>} : memref<9x384xf32, #tpu.memory_space<vmem>>, vector<3x384xf32>,
    return
  }
  func.func @transform_0(%arg0: i32) -> (i32, i32) {
    %c0_i32 = arith.constant 0 : i32
    %c0_i32_0 = arith.constant 0 : i32
    %c0_i32_1 = arith.constant 0 : i32
    return %c0_i32, %c0_i32_0 : i32, i32
  }
  func.func @transform_1(%arg0: i32) -> (i32, i32) {
    %c0_i32 = arith.constant 0 : i32
    %c0_i32_0 = arith.constant 0 : i32
    %c0_i32_1 = arith.constant 0 : i32
    return %c0_i32, %c0_i32_0 : i32, i32
  }
  func.func @transform_2(%arg0: i32) -> (i32, i32) {
    %c0_i32 = arith.constant 0 : i32
    %c0_i32_0 = arith.constant 0 : i32
    return %c0_i32, %arg0 : i32, i32
  }
  func.func @transform_3(%arg0: i32) -> (i32, i32) {
    %c0_i32 = arith.constant 0 : i32
    %c0_i32_0 = arith.constant 0 : i32
    return %c0_i32, %arg0 : i32, i32
  }
  func.func @transform_4(%arg0: i32) -> (i32, i32) {
    %c0_i32 = arith.constant 0 : i32
    %c0_i32_0 = arith.constant 0 : i32
    return %c0_i32, %arg0 : i32, i32
  }
}

</mosaic_0001>

<bundles_post_ra>
// kernel: tpu_custom_call.1
= control target key start
LH: loop header
LB: loop body
LE: loop exit
PB: predicated region body
PF: predicated region fallthrough
CT: control target
= control target key end

     0   :  { %9 = vsyncpa [#allocation3], 0  ;;  %s1452_s0 = inlined_call_operand.hbm [shape: f32[8,36], index: 0, kind: input, shape index: {}]   ;;  %s1453_s1 = inlined_call_operand.vmem [shape: f32[3,1], index: 1, kind: input, shape index: {}]   ;;  %s1454_s2 = inlined_call_operand.hbm [shape: f32[4,768], index: 2, kind: input, shape index: {}]   ;;  %s1455_s3 = inlined_call_operand.vmem [shape: f32[4,256], index: 3, kind: input, shape index: {}]   ;;  %s1456_s4 = inlined_call_operand.hbm [shape: f32[9,768], index: 4, kind: output, shape index: {}]  }
   0x1   :  { %10 = vsyncpa [#allocation6], 0 }
   0x2   :  { %12 = vsyncpa [#allocation6 + $0x1], 0 }
   0x3   :  { %13 = vsyncpa [#allocation4], 0 }
   0x4   :  { %15 = vsyncpa [#allocation4 + $0x1], 0  ;;  %s1107_s15 = smov 0   ;;  %s1109_s16 = smov 0  }
   0x5   :  { %s1111_s17 = smov 0   ;;  %s1113_s18 = smov 0  }
   0x6 LB: > { %s1128_s19 = sadd.s32 4294967295, %s1062_s18   ;;  %s814_s20 = sadd.s32 4294967294, %s1062_s18   ;;  %s1062_s18 = sphi %s1113_s18, %s1479_s18   ;;  %s1058_s17 = sphi %s1111_s17, %s1478_s17   ;;  %s1054_s16 = sphi %s1109_s16, %s1477_s16   ;;  %s1050_s15 = sphi %s1107_s15, %s1476_s15  }
   0x7   : > { %p83_p0 = scmp.ne.s32.totalorder %s1054_s16, %s1050_s15  ;;  %p1457_p1 = scmp.eq.s32.totalorder %s1128_s19, 0 }
   0x8   : > { %p139_p3 = scmp.eq.s32.totalorder %s814_s20, 1  ;;  %p815_p5 = scmp.ge.s32.totalorder %s1062_s18, 1 }
   0x9   : > { %p1137_p4 = por %p1457_p1, %p83_p0  ;;  %p146_p7 = scmp.lt.s32.totalorder %s1062_s18, 3 }
   0xa   : > { %p1142_p6 = por %p139_p3, %p83_p0  ;;  %s1064_s24 = smov [#allocation2]  }
   0xb   : > { %s1461_s21 = scalar_select %p1137_p4, 1, 0 }
   0xc   : > { %s1462_s22 = scalar_select %p1142_p6, 1, 0 }
   0xd   : > { %p1147_p8 = pnand %p815_p5, %p146_p7  ;;  %s159_s25 = sshll.u32 %s1064_s24, 4  ;;  %s160_s25 = int_to_ptr.vmem [resolvable:$true] %s159_s25 }
   0xe   : > { %s1155_s26 = sadd.s32 1, %s1062_s18   ;;  %s70_s30 = sadd.s32 1, %s1058_s17 }
   0xf   : > { %s1463_s23 = scalar_select %p1147_p8, 1, 0 }
  0x10   : > { %p862_p10 = pneg %p1147_p8  ;;  %s67_s28 = ssub.s32 %s1062_s18, %s1155_s26 }
  0x11   : > { %p1165_p12 = scmp.eq.s32.totalorder %s67_s28, 0  ;;  %p77_p13 = scmp.ne.s32.totalorder %s1058_s17, %s1054_s16 }
  0x12   : > { %p1159_p11 = pnand %p862_p10, %p1457_p1  ;;  %s951_s5 = scalar_lea.vmem %s160_s25, 128 }
  0x13   : > { %p952_p3 = scmp.ne.s32.totalorder %s160_s25, %s951_s5  ;;  %p959_p9 = scmp.lt.s32.totalorder %s160_s25, %s160_s25 }
  0x14   : > { %p942_p0 = pneg %p1159_p11  ;;  %p960_p2 = scmp.lt.s32.totalorder %s951_s5, %s951_s5 }
  0x16   : > { %p954_p5 = pnand %p952_p3, %p942_p0  ;;  %p961_p10 = por %p960_p2, %p959_p9 }
  0x18   : > { %p955_p7 = pneg %p954_p5 }
  0x1a   : > { %p962_p1 = pnand %p961_p10, %p955_p7 }
  0x1c   : > { %965 = shalt.err (!%p962_p1)
}
  0x1d   : > { %865 = dma.hbm_to_vmem [thread:$0]  (!%p1159_p11), %s1452_s0, 128, %s160_s25, [#allocation3]  }
  0x1e   : > { %s1182_s8 = scalar_select %p1165_p12, %s1058_s17, %s70_s30  }
  0x1f   : > { %p78_p1 = scmp.eq.s32.totalorder %s1062_s18, 0  ;;  %p1466_p2 = scmp.eq.s32.totalorder %s1128_s19, 1 }
  0x20   : > { %p875_p0 = scmp.lt.s32.totalorder %s1062_s18, 2  ;;  %s173_s10 = sand.u32 1, %s1058_s17  }
  0x21   : > { %p1190_p9 = por %p1466_p2, %p77_p13  ;;  %p79_p3 = por %p78_p1, %p77_p13 }
  0x22   : > { %s851_s11 = smul.u32 12, %s173_s10  ;;  %s174_s28 = scalar_lea.sflag [#allocation6], %s173_s10 }
  0x23   : > { %s1467_s9 = scalar_select %p1190_p9, 1, 0 }
  0x24   : > { %s830_s12 = smul.u32 192, %s1062_s18  ;;  %p1200_p5 = pnand %p875_p0, %p79_p3 }
  0x25   : > { %s177_s25 = scalar_lea.vmem [#allocation5], %s851_s11  ;;  %s971_s6 = scalar_lea.hbm %s1454_s2, 384 }
  0x26   : > { %s1207_s24 = scalar_lea.hbm %s1454_s2, %s830_s12  ;;  %s185_s27 = sshll.u32 %s177_s25, 4  ;;  %s186_s27 = int_to_ptr.vmem [resolvable:$true] %s185_s27 }
  0x27   : > { %s966_s29 = scalar_lea.hbm %s1207_s24, 192  ;;  %p968_p12 = pneg %p1200_p5 }
  0x28   : > { %p967_p11 = scmp.ne.s32.totalorder %s1207_s24, %s966_s29  ;;  %p972_p10 = scmp.lt.s32.totalorder %s1207_s24, %s1454_s2 }
  0x29   : > { %p973_p1 = scmp.lt.s32.totalorder %s971_s6, %s966_s29 }
  0x2a   : > { %p969_p13 = pnand %p968_p12, %p967_p11 }
  0x2b   : > { %p974_p2 = por %p973_p1, %p972_p10 }
  0x2c   : > { %p970_p7 = pneg %p969_p13 }
  0x2e   : > { %p975_p0 = pnand %p974_p2, %p970_p7 }
  0x30   : > { %978 = shalt.err (!%p975_p0)
}
  0x31   : > { %s979_s11 = scalar_lea.vmem %s186_s27, 192  ;;  %s1065_s10 = smov [#allocation5]  }
  0x32   : > { %p980_p3 = scmp.ne.s32.totalorder %s186_s27, %s979_s11  ;;  %s984_s14 = sshll.u32 %s1065_s10, 4  ;;  %s985_s14 = int_to_ptr.vmem [resolvable:$false] %s984_s14 }
  0x33   : > { %s986_s20 = scalar_lea.vmem %s985_s14, 384  ;;  %p987_p11 = scmp.lt.s32.totalorder %s186_s27, %s985_s14 }
  0x34   : > { %p982_p6 = pnand %p980_p3, %p968_p12  ;;  %p988_p13 = scmp.lt.s32.totalorder %s986_s20, %s979_s11 }
  0x36   : > { %p983_p9 = pneg %p982_p6  ;;  %p989_p4 = por %p988_p13, %p987_p11 }
  0x38   : > { %p990_p8 = pnand %p989_p4, %p983_p9 }
  0x3a   : > { %993 = shalt.err (!%p990_p8)
}
  0x3b   : > { %869 = dma.hbm_to_vmem [thread:$0]  (!%p1200_p5), %s1207_s24, 192, %s186_s27, %s174_s28  }
  0x3c   : > { %p1469_p7 = scmp.ne.s32.totalorder %s1463_s23, 0 }
  0x3d   : > { %p1470_p10 = scmp.eq.s32.totalorder (!%p1469_p7), %s1128_s19, 0 }
  0x3e   : > { %201 = sbr.rel (%p1469_p7) target bundleno = 748 (0x2ec), region = 36 }
  0x43   : > { %1037 = dma.done.wait (%p1470_p10), [#allocation3], 128   ;;  %p1471_p6 = pmov %p1470_p10 }
  0x44   : > { %s1230_s25 = sand.u32 1, %s1054_s16   ;;  %p1472_p4 = scmp.ne.s32.totalorder %s1461_s21, 0 }
  0x45   : > { %1039 = vsyncadd (%p1471_p6), [#allocation3], 4294967168  ;;  %s852_s29 = smul.u32 12, %s1230_s25  ;;  %s208_s30 = scalar_lea.sflag [#allocation6], %s1230_s25 }
  0x47   : > { %s211_s13 = scalar_lea.vmem [#allocation5], %s852_s29 }
  0x48   : > { %1041 = dma.done.wait (%p1472_p4), %s208_s30, 192  }
  0x49   : > { %1043 = vsyncadd (%p1472_p4), %s208_s30, 4294967104  ;;  %v257_v0 = vlaneseq  ;;  %v1240_v3 = vld [vmem:[%s211_s13 + $0x8] sm:$0xf]  ;;  %v1242_v4 = vld [vmem:[%s211_s13] sm:$0xff]  ;;  %p241_p8 = scmp.lt.s32.totalorder %s1128_s19, 1  ;;  %vm277_vm0 = vcmask 1042432  }
  0x4a   : > { %v255_v5 = vsub.f32 1.0, %v1240_v3  ;;  %v253_v6 = vsub.f32 1.0, %v1242_v4  ;;  %v1249_v7 = vcombine.high %v1242_v4, %v1242_v4  ;;  %s1066_s23 = smov 92   ;;  %s1067_s24 = smov 90   ;;  %v1068_v22 = vmov 0.0  }
  0x4b   : > { %v258_v1 = vshrl.u32 %v257_v0, 7  ;;  %s242_s21 = scalar_select %p241_p8, %s1128_s19, 1  ;;  %838 = vmatprep.subr.mxu1 %v1068_v22  ;;  %495 = vmatprep.mubr.f32.mxu0 %v1068_v22  ;;  %vm1074_vm1 = vmmov 0   ;;  %v1076_v28 = vmov 0   ;;  %v572_v29 = vld [vmem:[%s1453_s1] sm:$0x7] }
  0x4c   : > { %v254_v10 = vsub.f32 1.0, %v1249_v7  ;;  %s1069_s7 = smov 91   ;;  %s1070_s12 = smov 109   ;;  %848 = vmatprep.mubr.msk.f32.mxu1 %vm1074_vm1, %v1068_v22  ;;  %926 = vset.pattern.permute.xlu0 %v1076_v28  ;;  %vm403_vm2 = vcmask 736256   ;;  %vm407_vm3 = vcmask 1043456   ;;  %vm373_vm4 = vcmask 752640  }
  0x4d   : > { %v1238_v2 = vsub.s32 3, %v258_v1  ;;  %s821_s27 = sshll.u32 %s242_s21, 2  ;;  %s1071_s11 = smov 108   ;;  %vm388_vm5 = vcmask 744448   ;;  %vm343_vm6 = vcmask 891904   ;;  %vm358_vm7 = vcmask 883712  }
  0x4e   : > { %s244_s6 = scalar_lea.vmem %s1455_s3, %s821_s27  ;;  %s1072_s10 = smov 126   ;;  %vm313_vm8 = vcmask 1031168   ;;  %vm328_vm9 = vcmask 900096   ;;  %vm298_vm10 = vcmask 1039360   ;;  %vm421_vm11 = vcmask 293888  }
  0x4f   : > { %v268_v8 = vrot.slane %v255_v5, %v1238_v2  ;;  %v260_v9 = vrot.slane %v253_v6, %v1238_v2  ;;  %v264_v13 = vrot.slane %v254_v10, %v1238_v2  ;;  %v1282_v18 = vld [vmem:[%s244_s6] sm:$0xf]  ;;  %s1073_s14 = smov 110   ;;  %s1075_s20 = smov 127   ;;  %vm642_vm12 = vcmask 154624  }
  0x50   : > { %v256_v21 = vsub.f32 1.0, %v1282_v18  ;;  %s853_s13 = smul.u32 48, %s1230_s25  ;;  %p1473_p5 = scmp.ne.s32.totalorder %s1467_s9, 0 }
  0x51   : > { %v275_v11 = vmul.f32 %v268_v8, %v1240_v3  ;;  %v273_v12 = vmul.f32 %v260_v9, %v1242_v4  ;;  %v274_v16 = vmul.f32 %v264_v13, %v1249_v7 }
  0x52   : > { %v272_v24 = vrot.slane %v256_v21, %v1238_v2  ;;  %s1371_s21 = scalar_lea.vmem [#allocation7], %s853_s13 }
  0x53   : > { %v1260_v14 = vsel %vm277_vm0, %v275_v11, %v1240_v3  ;;  %v1268_v15 = vsel %vm277_vm0, %v273_v12, %v1242_v4  ;;  %v1280_v17 = vsel %vm277_vm0, %v274_v16, %v1249_v7  ;;  %s717_s27 = sshll.u32 %s1371_s21, 4  ;;  %s1405_s27 = int_to_ptr.vmem [resolvable:$true] %s717_s27 }
  0x54   : > { %369 = vrot.lane.b32.xlu1 %v1260_v14, %s1066_s23  ;;  %399 = vrot.lane.b32.xlu0 %v1260_v14, %s1067_s24  ;;  %v288_v19 = vrot.slane %v1260_v14, 4  ;;  %v286_v20 = vrot.slane %v1268_v15, 4  ;;  %v287_v23 = vrot.slane %v1280_v17, 4  ;;  %v276_v25 = vmul.f32 %v272_v24, %v1282_v18 }
  0x56   : > { %v281_v26 = vsel %vm277_vm0, %v276_v25, %v1282_v18 }
  0x57   : > { %v289_v27 = vrot.slane %v281_v26, 4 }
  0x58   : > { %365 = vrot.lane.b32.xlu1 %v1268_v15, %s1066_s23  ;;  %395 = vrot.lane.b32.xlu0 %v1268_v15, %s1067_s24 }
  0x5c   : > { %367 = vrot.lane.b32.xlu1 %v1280_v17, %s1066_s23  ;;  %397 = vrot.lane.b32.xlu0 %v1280_v17, %s1067_s24 }
  0x60   : > { %384 = vrot.lane.b32.xlu1 %v288_v19, %s1069_s7  ;;  %380 = vrot.lane.b32.xlu0 %v286_v20, %s1069_s7 }
  0x64   : > { %337 = vrot.lane.b32.xlu1 %v1280_v17, %s1070_s12  ;;  %382 = vrot.lane.b32.xlu0 %v287_v23, %s1069_s7 }
  0x68   : > { %352 = vrot.lane.b32.xlu1 %v287_v23, %s1071_s11  ;;  %339 = vrot.lane.b32.xlu0 %v1260_v14, %s1070_s12 }
  0x6c   : > { %401 = vrot.lane.b32.xlu1 %v281_v26, %s1067_s24  ;;  %354 = vrot.lane.b32.xlu0 %v288_v19, %s1071_s11  ;;  %s831_s24 = smul.u32 384, %s1128_s19  ;;  %s704_s19 = scalar_lea.sflag [#allocation4], %s1230_s25 }
  0x6e   : > { %s1403_s6 = scalar_lea.hbm %s1456_s4, %s831_s24 }
  0x70   : > { %350 = vrot.lane.b32.xlu1 %v286_v20, %s1071_s11  ;;  %335 = vrot.lane.b32.xlu0 %v1268_v15, %s1070_s12 }
  0x74   : > { %386 = vrot.lane.b32.xlu1 %v289_v27, %s1069_s7  ;;  %371 = vrot.lane.b32.xlu0 %v281_v26, %s1066_s23  ;;  %s1077_s23 = smov 19   ;;  %s994_s7 = scalar_lea.vmem %s1405_s27, 768 }
  0x75   : > { %p995_p9 = scmp.ne.s32.totalorder %s1405_s27, %s994_s7 }
  0x77   : > { %p996_p12 = pnand %p995_p9, %p1473_p5 }
  0x78   : > { %309 = vrot.lane.b32.xlu1 %v1260_v14, %s1072_s10  ;;  %307 = vrot.lane.b32.xlu0 %v1280_v17, %s1072_s10 }
  0x79   : > { %p997_p1 = pneg %p996_p12 }
  0x7c   : > { %324 = vrot.lane.b32.xlu1 %v288_v19, %s1073_s14  ;;  %322 = vrot.lane.b32.xlu0 %v287_v23, %s1073_s14 }
  0x80   : > { %320 = vrot.lane.b32.xlu1 %v286_v20, %s1073_s14  ;;  %305 = vrot.lane.b32.xlu0 %v1268_v15, %s1072_s10 }
  0x84   : > { %356 = vrot.lane.b32.xlu1 %v289_v27, %s1071_s11  ;;  %341 = vrot.lane.b32.xlu0 %v281_v26, %s1070_s12 }
  0x88   : > { %294 = vrot.lane.b32.xlu1 %v288_v19, %s1075_s20  ;;  %292 = vrot.lane.b32.xlu0 %v287_v23, %s1075_s20 }
  0x8c   : > { %311 = vrot.lane.b32.xlu1 %v281_v26, %s1072_s10  ;;  %290 = vrot.lane.b32.xlu0 %v286_v20, %s1075_s20 }
  0x90   : > { %296 = vrot.lane.b32.xlu1 %v289_v27, %s1075_s20  ;;  %326 = vrot.lane.b32.xlu0 %v289_v27, %s1073_s14 }
  0x94   : > { %575 = vperm.xlu0 %926, %v572_v29   ;;  %600 = vrot.lane.b32.xlu1 %v1242_v4, %s1070_s12 }
  0x98   : > { %602 = vrot.lane.b32.xlu1 %v1249_v7, %s1070_s12  ;;  %604 = vrot.lane.b32.xlu0 %v1240_v3, %s1070_s12 }
  0x9c   : > { %606 = vrot.lane.b32.xlu1 %v1282_v18, %s1070_s12 }
  0xc6   : > { %v370_v30 = vpop.permute.xlu1 %369  ;;  %v400_v31 = vpop.permute.xlu0 %399 }
  0xca   : > { %v366_v32 = vpop.permute.xlu1 %365  ;;  %v396_v33 = vpop.permute.xlu0 %395 }
  0xce   : > { %v368_v34 = vpop.permute.xlu1 %367  ;;  %v398_v35 = vpop.permute.xlu0 %397 }
  0xcf   : > { %v405_v36 = vsel %vm403_vm2, %v398_v35, %v400_v31  ;;  %v404_v37 = vsel %vm403_vm2, %v396_v33, %v398_v35  ;;  %v374_v42 = vsel %vm373_vm4, %v366_v32, %v368_v34  ;;  %v375_v43 = vsel %vm373_vm4, %v368_v34, %v370_v30  ;;  %v420_v35 = vld [vmem:[#allocation2] sm:$0xff] }
  0xd0   : > { %822 = vmatprep.subr.msk.mxu0 %vm407_vm3, %v405_v36 }
  0xd1   : > { %823 = vmatpush1.msk.msra.mxu0 %vm407_vm3, %v404_v37 }
  0xd2   : > { %v385_v38 = vpop.permute.xlu1 %384  ;;  %v381_v39 = vpop.permute.xlu0 %380 }
  0xd6   : > { %v338_v40 = vpop.permute.xlu1 %337  ;;  %v383_v41 = vpop.permute.xlu0 %382 }
  0xd7   : > { %v389_v44 = vsel %vm388_vm5, %v381_v39, %v383_v41  ;;  %v390_v45 = vsel %vm388_vm5, %v383_v41, %v385_v38 }
  0xd8   : > { %v418_v46 = vsel %vm407_vm3, %v375_v43, %v390_v45  ;;  %v417_v47 = vsel %vm407_vm3, %v374_v42, %v389_v44 }
  0xd9   : > { %455 = vmatprep.subr.mxu0 %v418_v46 }
  0xda   : > { %v353_v48 = vpop.permute.xlu1 %352  ;;  %456 = vmatpush1.msra.mxu0 %v417_v47  ;;  %v340_v49 = vpop.permute.xlu0 %339 }
  0xdb   : > { %v345_v52 = vsel %vm343_vm6, %v338_v40, %v340_v49 }
  0xde   : > { %v402_v50 = vpop.permute.xlu1 %401  ;;  %v355_v51 = vpop.permute.xlu0 %354 }
  0xdf   : > { %v360_v53 = vsel %vm358_vm7, %v353_v48, %v355_v51  ;;  %v406_v54 = vsel %vm403_vm2, %v400_v31, %v402_v50 }
  0xe0   : > { %839 = vmatpush3.msk.msra.mxu1 %vm407_vm3, %v406_v54  ;;  %v415_v55 = vsel %vm407_vm3, %v345_v52, %v360_v53 }
  0xe1   : > { %457 = vmatprep.subr.mxu0 %v415_v55  ;;  %840 = vmatprep.subr.mxu1 %v1068_v22 }
  0xe2   : > { %v351_v56 = vpop.permute.xlu1 %350  ;;  %v336_v57 = vpop.permute.xlu0 %335 }
  0xe3   : > { %v359_v58 = vsel %vm358_vm7, %v351_v56, %v353_v48  ;;  %v344_v59 = vsel %vm343_vm6, %v336_v57, %v338_v40 }
  0xe4   : > { %v414_v60 = vsel %vm407_vm3, %v344_v59, %v359_v58 }
  0xe5   : > { %458 = vmatpush1.msra.mxu0 %v414_v60 }
  0xe6   : > { %v387_v61 = vpop.permute.xlu1 %386  ;;  %v372_v62 = vpop.permute.xlu0 %371 }
  0xe7   : > { %v391_v63 = vsel %vm388_vm5, %v385_v38, %v387_v61  ;;  %v376_v0 = vsel %vm373_vm4, %v370_v30, %v372_v62 }
  0xe8   : > { %v419_v1 = vsel %vm407_vm3, %v376_v0, %v391_v63 }
  0xe9   : > { %841 = vmatpush3.msra.mxu1 %v419_v1 }
  0xea   : > { %v310_v5 = vpop.permute.xlu1 %309  ;;  %v308_v6 = vpop.permute.xlu0 %307  ;;  %842 = vmatprep.subr.mxu1 %v1068_v22 }
  0xeb   : > { %v315_v10 = vsel %vm313_vm8, %v308_v6, %v310_v5 }
  0xee   : > { %v325_v8 = vpop.permute.xlu1 %324  ;;  %v323_v9 = vpop.permute.xlu0 %322 }
  0xef   : > { %v330_v11 = vsel %vm328_vm9, %v323_v9, %v325_v8 }
  0xf0   : > { %v412_v12 = vsel %vm407_vm3, %v315_v10, %v330_v11 }
  0xf1   : > { %459 = vmatprep.subr.mxu0 %v412_v12 }
  0xf2   : > { %v321_v13 = vpop.permute.xlu1 %320  ;;  %v306_v16 = vpop.permute.xlu0 %305 }
  0xf3   : > { %v329_v19 = vsel %vm328_vm9, %v321_v13, %v323_v9  ;;  %v314_v20 = vsel %vm313_vm8, %v306_v16, %v308_v6 }
  0xf4   : > { %v411_v21 = vsel %vm407_vm3, %v314_v20, %v329_v19 }
  0xf5   : > { %460 = vmatpush1.msra.mxu0 %v411_v21 }
  0xf6   : > { %v357_v23 = vpop.permute.xlu1 %356  ;;  %v342_v24 = vpop.permute.xlu0 %341 }
  0xf7   : > { %v361_v25 = vsel %vm358_vm7, %v355_v51, %v357_v23  ;;  %v346_v26 = vsel %vm343_vm6, %v340_v49, %v342_v24  ;;  %v620_v24 = vrot.slane %v1242_v4, %v1238_v2 }
  0xf8   : > { %v416_v27 = vsel %vm407_vm3, %v346_v26, %v361_v25  ;;  %v624_v26 = vrot.slane %v1249_v7, %v1238_v2 }
  0xf9   : > { %843 = vmatpush3.msra.mxu1 %v416_v27 }
  0xfa   : > { %v295_v28 = vpop.permute.xlu1 %294  ;;  %v293_v29 = vpop.permute.xlu0 %292  ;;  %844 = vmatprep.subr.mxu1 %v1068_v22 }
  0xfb   : > { %v300_v30 = vsel %vm298_vm10, %v293_v29, %v295_v28 }
  0xfc   : > { %v409_v31 = vsel %vm407_vm3, %v1280_v17, %v300_v30 }
  0xfd   : > { %461 = vmatprep.subr.mxu0 %v409_v31  ;;  %v632_v31 = vrot.slane %v1282_v18, %v1238_v2 }
  0xfe   : > { %v312_v32 = vpop.permute.xlu1 %311  ;;  %v291_v33 = vpop.permute.xlu0 %290 }
  0xff   : > { %v299_v34 = vsel %vm298_vm10, %v291_v33, %v293_v29  ;;  %v316_v39 = vsel %vm313_vm8, %v310_v5, %v312_v32  ;;  %v628_v33 = vrot.slane %v1240_v3, %v1238_v2 }
 0x100   : > { %v408_v36 = vsel %vm407_vm3, %v1268_v15, %v299_v34 }
 0x101   : > { %462 = vmatpush1.msra.mxu0 %v408_v36 }
 0x102   : > { %v297_v37 = vpop.permute.xlu1 %296  ;;  %824 = vmatmul.mubr.msk.f32.vlgmr.msra.gmra.mxu0 %vm421_vm11, %v420_v35  ;;  %v327_v38 = vpop.permute.xlu0 %326 }
 0x103   : > { %v301_v40 = vsel %vm298_vm10, %v295_v28, %v297_v37  ;;  %v331_v17 = vsel %vm328_vm9, %v325_v8, %v327_v38 }
 0x104   : > { %v413_v41 = vsel %vm407_vm3, %v316_v39, %v331_v17  ;;  %v410_v42 = vsel %vm407_vm3, %v1260_v14, %v301_v40 }
 0x105   : > { %845 = vmatpush3.msra.mxu1 %v413_v41 }
 0x106   : > { %846 = vmatprep.subr.mxu1 %v1068_v22  ;;  %v601_v60 = vpop.permute.xlu1 %600 }
 0x107   : > { %847 = vmatpush3.msra.mxu1 %v410_v42 }
 0x108   : > { %849 = vmatmul.mubr.msk.f32.vlgmr.msra.gmra.mxu1 %vm421_vm11, %v420_v35 }
 0x10a   : > { %v603_v61 = vpop.permute.xlu1 %602 }
 0x10b   : > { %v608_v0 = vsel %vm343_vm6, %v601_v60, %v603_v61 }
 0x10e   : > { %v607_v9 = vpop.permute.xlu1 %606 }
 0x10f   : > { %v576_v15 = vpop.permute.xlu0 %575 }
 0x113   : > { %v605_v62 = vpop.permute.xlu0 %604 }
 0x114   : > { %v609_v1 = vsel %vm343_vm6, %v603_v61, %v605_v62  ;;  %v610_v16 = vsel %vm343_vm6, %v605_v62, %v607_v9 }
 0x1c2   : > { %v497_v43 = vpop.f32.mrf.mxu0 }
 0x1c3   : > { %v578_v44 = vadd.f32 %v576_v15, %v497_v43 }
 0x1c4   : > { %v499_v45 = vpop.f32.mrf.mxu0 }
 0x1c5   : > { %v581_v46 = vsub.f32 0.0, %v578_v44  ;;  %v579_v47 = vadd.f32 %v576_v15, %v499_v45 }
 0x1c7   : > { %v584_v48 = vmul.f32 1.442695, %v581_v46  ;;  %v582_v49 = vsub.f32 0.0, %v579_v47 }
 0x1c8   : > { %v568_v50 = vpop.f32.mrf.mxu1 }
 0x1c9   : > { %928 = vpow2.f32 %v584_v48  ;;  %v586_v51 = vmul.f32 1.442695, %v582_v49  ;;  %v580_v52 = vadd.f32 %v576_v15, %v568_v50 }
 0x1ca   : > { %v850_v53 = vpop.f32.mrf.mxu1 }
 0x1cb   : > { %930 = vpow2.f32 %v586_v51  ;;  %v583_v22 = vsub.f32 0.0, %v580_v52 }
 0x1cd   : > { %v588_v54 = vmul.f32 1.442695, %v583_v22 }
 0x1cf   : > { %932 = vpow2.f32 %v588_v54 }
 0x1d6   : > { %v929_v14 = vpop.eup %928 }
 0x1d7   : > { %v590_v55 = vadd.f32 1.0, %v929_v14 }
 0x1d8   : > { %v931_v56 = vpop.eup %930 }
 0x1d9   : > { %934 = vrcp.f32 %v590_v55  ;;  %v591_v57 = vadd.f32 1.0, %v931_v56 }
 0x1db   : > { %936 = vrcp.f32 %v591_v57 }
 0x1dc   : > { %v933_v58 = vpop.eup %932 }
 0x1dd   : > { %v592_v59 = vadd.f32 1.0, %v933_v58 }
 0x1df   : > { %938 = vrcp.f32 %v592_v59 }
 0x1e6   : > { %v935_v63 = vpop.eup %934 }
 0x1e7   : > { %660 = vst [vmem:[%s1371_s21] sm:$0x7] %v935_v63  ;;  %v614_v5 = vsub.f32 %v935_v63, %v608_v0 }
 0x1e8   : > { %v937_v6 = vpop.eup %936 }
 0x1e9   : > { %661 = vst [vmem:[%s1371_s21 + $0x8] sm:$0x7] %v937_v6  ;;  %v657_v8 = vand.u32 2147483647, %v614_v5  ;;  %v615_v10 = vsub.f32 %v937_v6, %v609_v1  ;;  %636 = vrot.lane.b32.xlu0 %v614_v5, %s1077_s23 }
 0x1eb   : > { %v691_v11 = vrot.slane %v657_v8, 2  ;;  %v658_v12 = vand.u32 2147483647, %v615_v10  ;;  %638 = vrot.lane.b32.xlu1 %v615_v10, %s1077_s23 }
 0x1ec   : > { %v939_v13 = vpop.eup %938 }
 0x1ed   : > { %662 = vst [vmem:[%s1371_s21 + $0x10] sm:$0x7] %v939_v13  ;;  %697 = vst [vmem:[%s1371_s21 + $0x18] ss:$-20 sps:$4 sm:$0xc1] %v691_v11   ;;  %v616_v19 = vsub.f32 %v939_v13, %v610_v16  ;;  %v692_v20 = vrot.slane %v658_v12, 2 }
 0x1ef   : > { %v659_v21 = vand.u32 2147483647, %v616_v19  ;;  %698 = vst [vmem:[%s1371_s21 + $0x20] ss:$-20 sps:$4 sm:$0xc1] %v692_v20   ;;  %640 = vrot.lane.b32.xlu0 %v616_v19, %s1077_s23 }
 0x1f1   : > { %v693_v23 = vrot.slane %v659_v21, 2 }
 0x1f3   : > { %699 = vst [vmem:[%s1371_s21 + $0x28] ss:$-20 sps:$4 sm:$0xc1] %v693_v23  }
 0x25b   : > { %v637_v25 = vpop.permute.xlu0 %636 }
 0x25c   : > { %v649_v27 = vmul.f32 %v637_v25, %v620_v24 }
 0x25d   : > { %v639_v28 = vpop.permute.xlu1 %638 }
 0x25e   : > { %v653_v29 = vadd.f32 %v649_v27, %v1242_v4  ;;  %v643_v30 = vsel %vm642_vm12, %v637_v25, %v639_v28 }
 0x25f   : > { %v650_v32 = vmul.f32 %v643_v30, %v624_v26 }
 0x260   : > { %v667_v34 = vrot.slane %v653_v29, 5 }
 0x261   : > { %v641_v35 = vpop.permute.xlu0 %640  ;;  %v654_v36 = vadd.f32 %v650_v32, %v1249_v7 }
 0x262   : > { %v644_v37 = vsel %vm642_vm12, %v639_v28, %v641_v35  ;;  %v652_v38 = vmul.f32 %v641_v35, %v632_v31  ;;  %671 = vrot.lane.b32.xlu1 %v667_v34, %s1070_s12 }
 0x263   : > { %v651_v4 = vmul.f32 %v644_v37, %v628_v33  ;;  %v668_v39 = vrot.slane %v654_v36, 5 }
 0x264   : > { %v656_v40 = vadd.f32 %v652_v38, %v1282_v18 }
 0x265   : > { %673 = vrot.lane.b32.xlu0 %v668_v39, %s1070_s12  ;;  %v655_v17 = vadd.f32 %v651_v4, %v1240_v3 }
 0x266   : > { %v670_v2 = vrot.slane %v656_v40, 5 }
 0x267   : > { %v669_v41 = vrot.slane %v655_v17, 5 }
 0x269   : > { %677 = vrot.lane.b32.xlu0 %v670_v2, %s1070_s12  ;;  %675 = vrot.lane.b32.xlu1 %v669_v41, %s1070_s12  ;;  %s1078_s12 = smov [#allocation7]  }
 0x26a   : > { %s998_s11 = sshll.u32 %s1078_s12, 4  ;;  %s999_s11 = int_to_ptr.vmem [resolvable:$false] %s998_s11 }
 0x26b   : > { %s1000_s10 = scalar_lea.vmem %s999_s11, 1536  ;;  %p1001_p2 = scmp.lt.s32.totalorder %s1405_s27, %s999_s11 }
 0x26c   : > { %p1002_p0 = scmp.lt.s32.totalorder %s1000_s10, %s994_s7 }
 0x26e   : > { %p1003_p3 = por %p1002_p0, %p1001_p2 }
 0x270   : > { %p1004_p11 = pnand %p1003_p3, %p997_p1 }
 0x2d4   : > { %v672_v7 = vpop.permute.xlu1 %671 }
 0x2d7   : > { %v674_v42 = vpop.permute.xlu0 %673 }
 0x2d8   : > { %v679_v18 = vsel %vm343_vm6, %v672_v7, %v674_v42 }
 0x2d9   : > { %685 = vst [vmem:[%s1371_s21] sm:$0x38] %v679_v18 }
 0x2db   : > { %v676_v3 = vpop.permute.xlu1 %675  ;;  %v678_v15 = vpop.permute.xlu0 %677 }
 0x2dc   : > { %v680_v43 = vsel %vm343_vm6, %v674_v42, %v676_v3  ;;  %v681_v44 = vsel %vm343_vm6, %v676_v3, %v678_v15 }
 0x2dd   : > { %686 = vst [vmem:[%s1371_s21 + $0x8] sm:$0x38] %v680_v43  ;;  %687 = vst [vmem:[%s1371_s21 + $0x10] sm:$0x38] %v681_v44 }
 0x2de   : > { %1007 = shalt.err (!%p1004_p11)
}
 0x2df   : > { %s1008_s14 = scalar_lea.hbm %s1403_s6, 768  ;;  %s1012_s30 = scalar_lea.hbm %s1456_s4, 1536 }
 0x2e0   : > { %p1009_p13 = scmp.ne.s32.totalorder %s1403_s6, %s1008_s14  ;;  %p1013_p6 = scmp.lt.s32.totalorder %s1403_s6, %s1456_s4 }
 0x2e1   : > { %p1014_p4 = scmp.lt.s32.totalorder %s1012_s30, %s1008_s14 }
 0x2e2   : > { %p1010_p7 = pnand %p1009_p13, %p1473_p5 }
 0x2e3   : > { %p1015_p8 = por %p1014_p4, %p1013_p6 }
 0x2e4   : > { %p1011_p10 = pneg %p1010_p7 }
 0x2e6   : > { %p1016_p9 = pnand %p1015_p8, %p1011_p10 }
 0x2e8   : > { %1019 = shalt.err (!%p1016_p9)
}
 0x2e9   : > { %s1079_s23 = smov 384   ;;  %s1080_s24 = smov 768  }
 0x2ea   : > { %s1081_s28 = smov 24  }
 0x2eb   : > { %860 = dma.vmem_to_hbm [thread:$0]  (%p1473_p5), %s1405_s27, 768, %s1403_s6, %s704_s19, %s1079_s23, %s1080_s24, %s1081_s28  }
 0x2ec PF: > { %s732_s5 = sand.u32 1, %s1050_s15   ;;  %p1474_p12 = scmp.ne.s32.totalorder %s1462_s22, 0 }
 0x2ed   : > { %p1475_p1 = scmp.ge.s32.totalorder %s1062_s18, 2  ;;  %s733_s7 = scalar_lea.sflag [#allocation4], %s732_s5 }
 0x2ef   : > { %p871_p2 = pnand %p1475_p1, %p1474_p12 }
 0x2f1   : > { %p872_p0 = pneg %p871_p2 }
 0x2f3   : > { %1045 = dma.done.wait (%p872_p0), %s733_s7, 768  }
 0x2f4   : > { %1047 = vsyncadd (%p872_p0), %s733_s7, 4294966528  ;;  %p18_p3 = scmp.ge.s32.totalorder %s1155_s26, 4   ;;  %s1476_s15 = smov %s1054_s16 }
 0x2f5   : > { %s1477_s16 = smov %s1058_s17  ;;  %s1478_s17 = smov %s1182_s8 }
 0x2f6   : > { %s1479_s18 = smov %s1155_s26  ;;  %20 = sbr.rel (!%p18_p3) target bundleno = 6 (0x6), region = 89 }
 0x2fb   :  { %738 = vsyncpa [#allocation3], 1 }
 0x2fc   :  { %740 = vsyncpa [#allocation3 + $0x1], 1 }
 0x2fd   :  { %741 = vsyncpa [#allocation6], 1 }
 0x2fe   :  { %743 = vsyncpa [#allocation6 + $0x1], 1 }
 0x2ff   :  { %744 = vsyncpa [#allocation4], 1 }
 0x300   :  { %746 = vsyncpa [#allocation4 + $0x1], 1 }

</bundles_post_ra>
